<compile_context>
chip_gen: v6e
topology: v6e:2x2x1
jax: 0.10.0
libtpu: 0.0.40
codegen_flags: <defaults>
</compile_context>

<pallas_src>
import functools

import jax
import jax.numpy as jnp
from jax.experimental import pallas as pl
from jax.experimental.pallas import tpu as pltpu

_LANE = 128


def _round_up(x, m):
    return ((x + m - 1) // m) * m


# ----------------------------- Pallas kernel --------------------------------
def _matmul_mfm_kernel(x_ref, w_ref, b_ref, o_ref, *, n_half):
    """o = max((x @ w + b)[:, :n_half], (x @ w + b)[:, n_half:]).

    Single MXU dot computes both conv halves side by side; n_half is a multiple
    of 128 so the split is lane-tile aligned. Accumulate / bias / max in f32.
    """
    y = jnp.dot(x_ref[...], w_ref[...], preferred_element_type=jnp.float32)
    y = y + b_ref[...]
    o_ref[...] = jnp.maximum(y[:, :n_half], y[:, n_half:]).astype(o_ref.dtype)


def _choose_tm(m, k_dim, n_half, out_bytes, *, max_tm=1024, vmem_budget=24 * 1024 * 1024):
    """Row tile choice.

    * multiple of 16 (bf16 activations pack (16,128) per vreg tile)
    * capped so double-buffered x/out tiles + resident fused weight/bias stay
      inside a 24 MiB budget (safe under the 32 MiB scoped limit we request)
    * when M is large enough, target an even number (>=4) of grid steps so the
      two v7x TensorCores both get work and each core's pipeline stays warm.
    """
    ms = _round_up(m, 16)
    per_row = 2 * (k_dim * 2 + n_half * out_bytes)                 # 2x-buffered x (bf16) + out tile
    resident = 2 * (k_dim * (2 * n_half) * 2 + (2 * n_half) * 4)   # fused weight (bf16) + bias (f32)
    cap = max(vmem_budget - resident, 16 * per_row) // per_row
    cap = max(16, (cap // 16) * 16)
    tm = min(max_tm, ms, cap)
    if ms >= 4 * 16:
        steps = max(4, pl.cdiv(ms, tm))
        if steps % 2:
            steps += 1
        tm = min(tm, _round_up(pl.cdiv(ms, steps), 16))
    return max(16, tm)


def matmul_mfm(x2d, w_fused, b_fused, n_half, *, out_dtype=jnp.float32, tm=None):
    """x2d: (M, K); w_fused: (K, 2*n_half) bf16; b_fused: (1, 2*n_half) f32.

    Returns (M, n_half) = max(x @ w0 + b0, x @ w1 + b1) where the two halves are
    the lane-dense, zero-padded halves of w_fused / b_fused (n_half % 128 == 0).
    """
    M, K = x2d.shape
    assert n_half % _LANE == 0 and w_fused.shape == (K, 2 * n_half)
    x2d = x2d.astype(jnp.bfloat16)
    out_bytes = jnp.dtype(out_dtype).itemsize
    if tm is None:
        tm = _choose_tm(M, K, n_half, out_bytes)
    Mp = pl.cdiv(M, tm) * tm
    if Mp != M:
        x2d = jnp.pad(x2d, ((0, Mp - M), (0, 0)))

    cost = pl.CostEstimate(
        flops=2 * Mp * K * (2 * n_half),
        transcendentals=0,
        bytes_accessed=(Mp * K * 2                 # activations (bf16)
                        + K * (2 * n_half) * 2     # fused weight (bf16)
                        + (2 * n_half) * 4         # fused bias (f32)
                        + Mp * n_half * out_bytes  # output
                        ),
    )

    kernel = functools.partial(_matmul_mfm_kernel, n_half=n_half)
    out = pl.pallas_call(
        kernel,
        out_shape=jax.ShapeDtypeStruct((Mp, n_half), out_dtype),
        grid_spec=pltpu.PrefetchScalarGridSpec(
            num_scalar_prefetch=0,
            grid=(Mp // tm,),
            in_specs=[
                pl.BlockSpec((tm, K), lambda i: (i, 0)),          # activations: tiled over rows
                pl.BlockSpec((K, 2 * n_half), lambda i: (0, 0)),  # fused weight: resident
                pl.BlockSpec((1, 2 * n_half), lambda i: (0, 0)),  # fused bias:   resident
            ],
            out_specs=pl.BlockSpec((tm, n_half), lambda i: (i, 0)),
        ),
        compiler_params=pltpu.CompilerParams(
            dimension_semantics=("parallel",),
            vmem_limit_bytes=32 * 1024 * 1024,
        ),
        cost_estimate=cost,
    )(x2d, w_fused, b_fused)
    return out[:M] if Mp != M else out


# ------------------------------- glue (JAX) ----------------------------------
def _im2col_nhwc(x, ksize, stride, padding):
    """x: (B, H, W, C) -> patches (B, Ho, Wo, ksize*ksize*C), ordering (kh, kw, c)."""
    B, H, W, C = x.shape
    xp = jnp.pad(x, ((0, 0), (padding, padding), (padding, padding), (0, 0)))
    Ho = (H + 2 * padding - ksize) // stride + 1
    Wo = (W + 2 * padding - ksize) // stride + 1
    cols = []
    for kh in range(ksize):
        for kw in range(ksize):
            cols.append(xp[:, kh:kh + stride * Ho:stride, kw:kw + stride * Wo:stride, :])
    return jnp.concatenate(cols, axis=-1), Ho, Wo


def _conv_weight_to_matmul(w_oihw):
    """(O, I, Kh, Kw) -> (Kh*Kw*I, O), matching the im2col (kh, kw, c) ordering."""
    O = w_oihw.shape[0]
    return jnp.transpose(w_oihw, (2, 3, 1, 0)).reshape(-1, O)


def _fuse_pad_weights(wm, bias, n_out):
    """(K, 2*n_out) weight + (2*n_out,) bias -> lane-dense fused (K, 2*Np), (1, 2*Np)."""
    K = wm.shape[0]
    Np = _round_up(n_out, _LANE)
    wp = jnp.zeros((K, 2 * Np), jnp.float32)
    wp = wp.at[:, :n_out].set(wm[:, :n_out])
    wp = wp.at[:, Np:Np + n_out].set(wm[:, n_out:])
    bp = jnp.zeros((1, 2 * Np), jnp.float32)
    bp = bp.at[0, :n_out].set(bias[:n_out])
    bp = bp.at[0, Np:Np + n_out].set(bias[n_out:])
    return wp, bp, Np


def _mfm_conv_pallas(x_nhwc, w_fused, b_fused, out_channels, ksize, stride, padding,
                     *, out_dtype):
    """Conv2d(in -> 2*out_channels) + MFM max via the fused Pallas matmul kernel.

    w_fused / b_fused are the pre-fused, lane-padded (Np = round_up(out,128)) weights
    produced once by prepare_group_params().
    """
    B = x_nhwc.shape[0]
    x_bf = x_nhwc.astype(jnp.bfloat16)
    if ksize == 1 and stride == 1 and padding == 0:
        Ho, Wo = x_bf.shape[1], x_bf.shape[2]
        p2d = x_bf.reshape(B * Ho * Wo, x_bf.shape[3])
    else:
        # TODO(synk): replace the HBM im2col slab with an in-kernel (kh,kw) reduction.
        patches, Ho, Wo = _im2col_nhwc(x_bf, ksize, stride, padding)
        p2d = patches.reshape(B * Ho * Wo, -1)
    n_half = w_fused.shape[1] // 2
    y = matmul_mfm(p2d, w_fused, b_fused, n_half, out_dtype=out_dtype)
    return y[:, :out_channels].reshape(B, Ho, Wo, out_channels)


# ------------------------------ group module ---------------------------------
def init_group_params(key, in_channels, out_channels, kernel_size):
    k1, k2, k3, k4 = jax.random.split(key, 4)
    fan_a = in_channels * 1 * 1
    wa = jax.random.normal(k1, (2 * in_channels, in_channels, 1, 1), jnp.float32) / jnp.sqrt(fan_a)
    ba = 0.01 * jax.random.normal(k2, (2 * in_channels,), jnp.float32)
    fan_b = in_channels * kernel_size * kernel_size
    wb = jax.random.normal(k3, (2 * out_channels, in_channels, kernel_size, kernel_size),
                           jnp.float32) / jnp.sqrt(fan_b)
    bb = 0.01 * jax.random.normal(k4, (2 * out_channels,), jnp.float32)
    return {"wa": wa, "ba": ba, "wb": wb, "bb": bb}


def prepare_group_params(params, in_channels, out_channels):
    """Hoisted weight prep (done ONCE, not per forward): transpose to matmul layout,
    fuse + lane-pad the two conv halves, cast weights to bf16, keep biases f32."""
    wa_m = _conv_weight_to_matmul(params["wa"].astype(jnp.float32))
    wa_f, ba_f, _ = _fuse_pad_weights(wa_m, params["ba"].astype(jnp.float32), in_channels)
    wb_m = _conv_weight_to_matmul(params["wb"].astype(jnp.float32))
    wb_f, bb_f, _ = _fuse_pad_weights(wb_m, params["bb"].astype(jnp.float32), out_channels)
    return {"wa": wa_f.astype(jnp.bfloat16), "ba": ba_f,
            "wb": wb_f.astype(jnp.bfloat16), "bb": bb_f}


@functools.partial(jax.jit, static_argnames=("out_channels", "kernel_size", "stride", "padding"))
def group_forward(prepped, x_nchw, *, out_channels, kernel_size, stride, padding):
    in_channels = x_nchw.shape[1]
    x = jnp.transpose(x_nchw, (0, 2, 3, 1))  # NCHW -> NHWC
    # conv_a (1x1 mfm): feeds the next conv -> bf16 intermediate (it is cast to bf16 anyway)
    x = _mfm_conv_pallas(x, prepped["wa"], prepped["ba"], in_channels, 1, 1, 0,
                         out_dtype=jnp.bfloat16)
    # conv (kxk mfm): module output -> keep f32
    x = _mfm_conv_pallas(x, prepped["wb"], prepped["bb"], out_channels,
                         kernel_size, stride, padding, out_dtype=jnp.float32)
    return jnp.transpose(x, (0, 3, 1, 2))  # NHWC -> NCHW


# --------------------------- pure-JAX reference -------------------------------
def _bf16(x):
    # mirror the kernel's bf16 input quantization so the check can stay tight
    return x.astype(jnp.bfloat16).astype(jnp.float32)


def _mfm_conv_ref(x_nhwc, w_oihw, bias, out_channels, stride, padding):
    w_hwio = jnp.transpose(_bf16(w_oihw), (2, 3, 1, 0))
    y = jax.lax.conv_general_dilated(
        _bf16(x_nhwc), w_hwio, (stride, stride),
        [(padding, padding), (padding, padding)],
        dimension_numbers=("NHWC", "HWIO", "NHWC")) + bias
    return jnp.maximum(y[..., :out_channels], y[..., out_channels:])


def group_forward_ref(params, x_nchw, *, out_channels, kernel_size, stride, padding):
    in_channels = x_nchw.shape[1]
    x = jnp.transpose(x_nchw, (0, 2, 3, 1))
    x = _mfm_conv_ref(x, params["wa"], params["ba"], in_channels, 1, 0)
    x = _mfm_conv_ref(x, params["wb"], params["bb"], out_channels, stride, padding)
    return jnp.transpose(x, (0, 3, 1, 2))


# ----------------------------------- main -------------------------------------
if __name__ == "__main__":
    key = jax.random.PRNGKey(0)
    kx, kp = jax.random.split(key)

    B, Cin, H, W = 2, 4, 16, 16
    Cout, K, S, P = 8, 3, 1, 1

    x = jax.random.normal(kx, (B, Cin, H, W), jnp.float32)
    params = init_group_params(kp, Cin, Cout, K)
    prepped = prepare_group_params(params, Cin, Cout)   # one-time weight prep (hoisted)

    out = group_forward(prepped, x, out_channels=Cout, kernel_size=K, stride=S, padding=P)
    out = jax.block_until_ready(out)

    ref = group_forward_ref(params, x, out_channels=Cout, kernel_size=K, stride=S, padding=P)
    assert out.shape == (B, Cout, H, W), out.shape
    assert out.dtype == jnp.float32, out.dtype
    assert jnp.allclose(out, ref, atol=5e-3, rtol=5e-3), "mismatch vs reference"

    print("KERNEL_OK")
</pallas_src>

<mosaic_0001>
module attributes {stable_mosaic.version = 11 : i64} {
  func.func @_matmul_mfm_kernel(%arg0: i32, %arg1: memref<128x4xbf16, #tpu.memory_space<vmem>>, %arg2: memref<4x256xbf16, #tpu.memory_space<vmem>>, %arg3: memref<1x256xf32, #tpu.memory_space<vmem>>, %arg4: memref<128x128xbf16, #tpu.memory_space<vmem>>) attributes {dimension_semantics = [#tpu.dimension_semantics<parallel>], iteration_bounds = array<i64: 4>, scalar_prefetch = 0 : i64, scratch_operands = 0 : i64, tpu.core_type = #tpu.core_type<tc>, window_params = [{transform_indices = @transform_0, window_bounds = array<i64: 128, 4>}, {pipeline_mode = #tpu.pipeline_mode<synchronous>, transform_indices = @transform_1, window_bounds = array<i64: 4, 256>}, {pipeline_mode = #tpu.pipeline_mode<synchronous>, transform_indices = @transform_2, window_bounds = array<i64: 1, 256>}, {transform_indices = @transform_3, window_bounds = array<i64: 128, 128>}]} {
    %c0 = arith.constant 0 : index
    %c0_0 = arith.constant 0 : index
    %0 = vector.load %arg1[%c0, %c0_0] : memref<128x4xbf16, #tpu.memory_space<vmem>>, vector<128x4xbf16>
    %c0_1 = arith.constant 0 : index
    %c0_2 = arith.constant 0 : index
    %1 = vector.load %arg2[%c0_1, %c0_2] : memref<4x256xbf16, #tpu.memory_space<vmem>>, vector<4x256xbf16>
    %cst = arith.constant dense<0.000000e+00> : vector<128x256xf32>
    %2 = tpu.matmul %0, %1, %cst {dimension_numbers = #tpu.dot_dimension_numbers<[1], [0], [0], [1], [0, 0, 1, 1], [], []>} : vector<128x4xbf16>, vector<4x256xbf16>, vector<128x256xf32> -> vector<128x256xf32>
    %c0_3 = arith.constant 0 : index
    %c0_4 = arith.constant 0 : index
    %3 = vector.load %arg3[%c0_3, %c0_4] : memref<1x256xf32, #tpu.memory_space<vmem>>, vector<1x256xf32>
    %4 = vector.broadcast %3 : vector<1x256xf32> to vector<128x256xf32>
    %5 = arith.addf %2, %4 : vector<128x256xf32>
    %6 = vector.extract_strided_slice %5 {offsets = [0, 0], sizes = [128, 128], strides = [1, 1]} : vector<128x256xf32> to vector<128x128xf32>
    %7 = vector.extract_strided_slice %5 {offsets = [0, 128], sizes = [128, 128], strides = [1, 1]} : vector<128x256xf32> to vector<128x128xf32>
    %8 = arith.maximumf %6, %7 : vector<128x128xf32>
    %9 = arith.truncf %8 : vector<128x128xf32> to vector<128x128xbf16>
    %c0_5 = arith.constant 0 : index
    %c0_6 = arith.constant 0 : index
    %10 = vector.load %arg4[%c0_5, %c0_6] : memref<128x128xbf16, #tpu.memory_space<vmem>>, vector<128x128xbf16>
    tpu.vector_store %arg4[%c0_5, %c0_6], %9 {strides = array<i32>} : memref<128x128xbf16, #tpu.memory_space<vmem>>, vector<128x128xbf16>,
    return
  }
  func.func @transform_0(%arg0: i32) -> (i32, i32) {
    %c0_i32 = arith.constant 0 : i32
    %c0_i32_0 = arith.constant 0 : i32
    return %arg0, %c0_i32 : i32, i32
  }
  func.func @transform_1(%arg0: i32) -> (i32, i32) {
    %c0_i32 = arith.constant 0 : i32
    %c0_i32_0 = arith.constant 0 : i32
    %c0_i32_1 = arith.constant 0 : i32
    return %c0_i32, %c0_i32_0 : i32, i32
  }
  func.func @transform_2(%arg0: i32) -> (i32, i32) {
    %c0_i32 = arith.constant 0 : i32
    %c0_i32_0 = arith.constant 0 : i32
    %c0_i32_1 = arith.constant 0 : i32
    return %c0_i32, %c0_i32_0 : i32, i32
  }
  func.func @transform_3(%arg0: i32) -> (i32, i32) {
    %c0_i32 = arith.constant 0 : i32
    %c0_i32_0 = arith.constant 0 : i32
    return %arg0, %c0_i32 : i32, i32
  }
}

module attributes {stable_mosaic.version = 11 : i64} {
  func.func @_matmul_mfm_kernel(%arg0: i32, %arg1: memref<128x36xbf16, #tpu.memory_space<vmem>>, %arg2: memref<36x256xbf16, #tpu.memory_space<vmem>>, %arg3: memref<1x256xf32, #tpu.memory_space<vmem>>, %arg4: memref<128x128xf32, #tpu.memory_space<vmem>>) attributes {dimension_semantics = [#tpu.dimension_semantics<parallel>], iteration_bounds = array<i64: 4>, scalar_prefetch = 0 : i64, scratch_operands = 0 : i64, tpu.core_type = #tpu.core_type<tc>, window_params = [{transform_indices = @transform_0, window_bounds = array<i64: 128, 36>}, {pipeline_mode = #tpu.pipeline_mode<synchronous>, transform_indices = @transform_1, window_bounds = array<i64: 36, 256>}, {pipeline_mode = #tpu.pipeline_mode<synchronous>, transform_indices = @transform_2, window_bounds = array<i64: 1, 256>}, {transform_indices = @transform_3, window_bounds = array<i64: 128, 128>}]} {
    %c0 = arith.constant 0 : index
    %c0_0 = arith.constant 0 : index
    %0 = vector.load %arg1[%c0, %c0_0] : memref<128x36xbf16, #tpu.memory_space<vmem>>, vector<128x36xbf16>
    %c0_1 = arith.constant 0 : index
    %c0_2 = arith.constant 0 : index
    %1 = vector.load %arg2[%c0_1, %c0_2] : memref<36x256xbf16, #tpu.memory_space<vmem>>, vector<36x256xbf16>
    %cst = arith.constant dense<0.000000e+00> : vector<128x256xf32>
    %2 = tpu.matmul %0, %1, %cst {dimension_numbers = #tpu.dot_dimension_numbers<[1], [0], [0], [1], [0, 0, 1, 1], [], []>} : vector<128x36xbf16>, vector<36x256xbf16>, vector<128x256xf32> -> vector<128x256xf32>
    %c0_3 = arith.constant 0 : index
    %c0_4 = arith.constant 0 : index
    %3 = vector.load %arg3[%c0_3, %c0_4] : memref<1x256xf32, #tpu.memory_space<vmem>>, vector<1x256xf32>
    %4 = vector.broadcast %3 : vector<1x256xf32> to vector<128x256xf32>
    %5 = arith.addf %2, %4 : vector<128x256xf32>
    %6 = vector.extract_strided_slice %5 {offsets = [0, 0], sizes = [128, 128], strides = [1, 1]} : vector<128x256xf32> to vector<128x128xf32>
    %7 = vector.extract_strided_slice %5 {offsets = [0, 128], sizes = [128, 128], strides = [1, 1]} : vector<128x256xf32> to vector<128x128xf32>
    %8 = arith.maximumf %6, %7 : vector<128x128xf32>
    %c0_5 = arith.constant 0 : index
    %c0_6 = arith.constant 0 : index
    %9 = vector.load %arg4[%c0_5, %c0_6] : memref<128x128xf32, #tpu.memory_space<vmem>>, vector<128x128xf32>
    tpu.vector_store %arg4[%c0_5, %c0_6], %8 {strides = array<i32>} : memref<128x128xf32, #tpu.memory_space<vmem>>, vector<128x128xf32>,
    return
  }
  func.func @transform_0(%arg0: i32) -> (i32, i32) {
    %c0_i32 = arith.constant 0 : i32
    %c0_i32_0 = arith.constant 0 : i32
    return %arg0, %c0_i32 : i32, i32
  }
  func.func @transform_1(%arg0: i32) -> (i32, i32) {
    %c0_i32 = arith.constant 0 : i32
    %c0_i32_0 = arith.constant 0 : i32
    %c0_i32_1 = arith.constant 0 : i32
    return %c0_i32, %c0_i32_0 : i32, i32
  }
  func.func @transform_2(%arg0: i32) -> (i32, i32) {
    %c0_i32 = arith.constant 0 : i32
    %c0_i32_0 = arith.constant 0 : i32
    %c0_i32_1 = arith.constant 0 : i32
    return %c0_i32, %c0_i32_0 : i32, i32
  }
  func.func @transform_3(%arg0: i32) -> (i32, i32) {
    %c0_i32 = arith.constant 0 : i32
    %c0_i32_0 = arith.constant 0 : i32
    return %arg0, %c0_i32 : i32, i32
  }
}

</mosaic_0001>

<bundles_post_ra>
// kernel: group_forward.2
= control target key start
LH: loop header
LB: loop body
LE: loop exit
PB: predicated region body
PF: predicated region fallthrough
CT: control target
= control target key end

     0   :  { %s706_s12 = smov 0   ;;  %s790_s0 = inlined_call_operand.vmem [shape: bf16[512,4], index: 0, kind: input, shape index: {}]   ;;  %s791_s1 = inlined_call_operand.vmem [shape: bf16[4,256], index: 1, kind: input, shape index: {}]   ;;  %s792_s2 = inlined_call_operand.vmem [shape: f32[1,256], index: 2, kind: input, shape index: {}]   ;;  %s793_s3 = inlined_call_operand.vmem [shape: bf16[512,128], index: 3, kind: output, shape index: {}]  }
   0x1 LB: > { %s550_s13 = sadd.s32 4294967295, %s683_s12   ;;  %p554_p0 = scmp.ge.s32.totalorder %s683_s12, 1  ;;  %s683_s12 = sphi %s706_s12, %s13_s12  }
   0x2   : > { %p138_p1 = scmp.lt.s32.totalorder %s683_s12, 5 }
   0x4   : > { %p139_p2 = pnand %p554_p0, %p138_p1 }
   0x5   : > { %s555_s16 = sshll.u32 (!%p139_p2), %s550_s13, 4 }
   0x6   : > { %142 = sbr.rel (%p139_p2) target bundleno = 248 (0xf8), region = 32  ;;  %p163_p3 = scmp.lt.s32.totalorder (!%p139_p2), %s555_s16, 63 }
   0xb   : > { %v567_v0 = vld.sshfl [vmem:[%s791_s1] sm:$0x33 pattern:$0x76325410]  ;;  %vm278_vm0 = vcmask 1041408   ;;  %v685_v3 = vmov 0   ;;  %v194_v12 = vlaneseq }
   0xc   : > { %v252_v1 = vcombine.high %v567_v0, %v567_v0  ;;  %v280_v2 = vsel %vm278_vm0, %v567_v0, 0  ;;  %317 = vmatprep.mubr.bf16.mxu0 %v685_v3  ;;  %357 = vmatprep.mubr.bf16.mxu1 %v685_v3  ;;  %s795_s16 = smov (!%p163_p3, %s555_s16), 63  ;;  %vm253_vm1 = vcmask 31744   ;;  %v192_v16 = vld [vmem:[%s792_s2] sm:$0x3] }
   0xd   : > { %s556_s17 = sshll.u32 %s795_s16, 2  ;;  %v195_v13 = vshrl.u32 %v194_v12, 7 }
   0xe   : > { %568 = vmatprep.subr.msk.bf16.mxu0 %vm278_vm0, %v252_v1  ;;  %658 = vmatprep.subr.msk.bf16.mxu1 %vm278_vm0, %v252_v1  ;;  %s166_s20 = scalar_lea.vmem %s790_s0, %s556_s17  ;;  %s753_s25 = scalar_lea.vmem %s793_s3, %s556_s17 }
   0xf   : > { %300 = vmatpush1.bf16.msra.mxu0 %v280_v2  ;;  %659 = vmatpush1.bf16.msra.mxu1 %v280_v2  ;;  %v669_v4 = vld [vmem:[%s166_s20] sm:$0xff]   ;;  %v671_v6 = vld [vmem:[%s166_s20 + $0x8] sm:$0xff]   ;;  %v673_v8 = vld [vmem:[%s166_s20 + $0x10] sm:$0xff]   ;;  %v200_v14 = vsub.s32 1, %v195_v13  ;;  %v196_v15 = vsub.s32 0, %v195_v13 }
  0x10   : > { %v670_v5 = vld [vmem:[%s166_s20 + $0x20] sm:$0xff]   ;;  %v672_v7 = vld [vmem:[%s166_s20 + $0x28] sm:$0xff]   ;;  %v674_v9 = vld [vmem:[%s166_s20 + $0x30] sm:$0xff]  }
  0x11   : > { %v675_v10 = vld [vmem:[%s166_s20 + $0x18] sm:$0xff]   ;;  %v736_v19 = vrot.slane %v192_v16, %v200_v14  ;;  %v738_v21 = vrot.slane %v192_v16, %v196_v15 }
  0x12   : > { %569 = vmatmul.mubr.msk.bf16.vlgmr.msra.gmra.mxu0 %vm253_vm1, %v669_v4  ;;  %573 = vmatmul.mubr.msk.bf16.vlgmr.msra.gmra.mxu1 %vm253_vm1, %v670_v5  ;;  %v676_v11 = vld [vmem:[%s166_s20 + $0x38] sm:$0xff]  }
  0x13   : > { %327 = vmatprep.mubr.bf16.mxu0 %v685_v3  ;;  %367 = vmatprep.mubr.bf16.mxu1 %v685_v3 }
  0x1a   : > { %570 = vmatmul.mubr.msk.bf16.gmra.mxu0 %vm253_vm1, %v671_v6  ;;  %574 = vmatmul.mubr.msk.bf16.gmra.mxu1 %vm253_vm1, %v672_v7 }
  0x1b   : > { %337 = vmatprep.mubr.bf16.mxu0 %v685_v3  ;;  %377 = vmatprep.mubr.bf16.mxu1 %v685_v3 }
  0x22   : > { %571 = vmatmul.mubr.msk.bf16.gmra.mxu0 %vm253_vm1, %v673_v8  ;;  %575 = vmatmul.mubr.msk.bf16.gmra.mxu1 %vm253_vm1, %v674_v9 }
  0x23   : > { %347 = vmatprep.mubr.bf16.mxu0 %v685_v3  ;;  %387 = vmatprep.mubr.bf16.mxu1 %v685_v3 }
  0x2a   : > { %572 = vmatmul.mubr.msk.bf16.gmra.mxu0 %vm253_vm1, %v675_v10  ;;  %576 = vmatmul.mubr.msk.bf16.gmra.mxu1 %vm253_vm1, %v676_v11 }
  0xd2   : > { %v319_v17 = vpop.f32.mrf.mxu0  ;;  %v359_v18 = vpop.f32.mrf.mxu1 }
  0xd3   : > { %v320_v28 = vadd.f32 %v319_v17, %v738_v21  ;;  %v360_v32 = vadd.f32 %v359_v18, %v738_v21 }
  0xd4   : > { %v321_v20 = vpop.f32.mrf.mxu0  ;;  %v361_v22 = vpop.f32.mrf.mxu1 }
  0xd5   : > { %v322_v24 = vadd.f32 %v321_v20, %v736_v19  ;;  %v362_v26 = vadd.f32 %v361_v22, %v736_v19 }
  0xd6   : > { %v323_v23 = vpop.f32.mrf.mxu0  ;;  %v363_v25 = vpop.f32.mrf.mxu1 }
  0xd7   : > { %v324_v29 = vadd.f32 %v323_v23, %v738_v21  ;;  %v364_v33 = vadd.f32 %v363_v25, %v738_v21  ;;  %v398_v36 = vmax.f32 %v320_v28, %v322_v24  ;;  %v406_v39 = vmax.f32 %v360_v32, %v362_v26 }
  0xd8   : > { %v325_v27 = vpop.f32.mrf.mxu0  ;;  %v365_v31 = vpop.f32.mrf.mxu1 }
  0xd9   : > { %v326_v30 = vadd.f32 %v325_v27, %v736_v19  ;;  %v366_v34 = vadd.f32 %v365_v31, %v736_v19 }
  0xda   : > { %v329_v35 = vpop.f32.mrf.mxu0  ;;  %v369_v38 = vpop.f32.mrf.mxu1 }
  0xdb   : > { %v399_v37 = vmax.f32 %v324_v29, %v326_v30  ;;  %v407_v40 = vmax.f32 %v364_v33, %v366_v34  ;;  %v330_v50 = vadd.f32 %v329_v35, %v738_v21  ;;  %v370_v54 = vadd.f32 %v369_v38, %v738_v21 }
  0xdc   : > { %v331_v41 = vpop.f32.mrf.mxu0  ;;  %v371_v43 = vpop.f32.mrf.mxu1 }
  0xdd   : > { %v614_v42 = vpack.c.bf16 %v399_v37, %v398_v36  ;;  %v634_v44 = vpack.c.bf16 %v407_v40, %v406_v39  ;;  %v332_v46 = vadd.f32 %v331_v41, %v736_v19  ;;  %v372_v48 = vadd.f32 %v371_v43, %v736_v19 }
  0xde   : > { %v333_v45 = vpop.f32.mrf.mxu0  ;;  %v373_v47 = vpop.f32.mrf.mxu1 }
  0xdf   : > { %615 = vst [vmem:[%s753_s25] sm:$0xff] %v614_v42   ;;  %654 = vst [vmem:[%s753_s25 + $0x20] sm:$0xff] %v634_v44   ;;  %v334_v51 = vadd.f32 %v333_v45, %v738_v21  ;;  %v374_v55 = vadd.f32 %v373_v47, %v738_v21  ;;  %v400_v58 = vmax.f32 %v330_v50, %v332_v46 }
  0xe0   : > { %v335_v49 = vpop.f32.mrf.mxu0  ;;  %v375_v53 = vpop.f32.mrf.mxu1  ;;  %v408_v61 = vmax.f32 %v370_v54, %v372_v48 }
  0xe1   : > { %v336_v52 = vadd.f32 %v335_v49, %v736_v19  ;;  %v376_v56 = vadd.f32 %v375_v53, %v736_v19 }
  0xe2   : > { %v339_v57 = vpop.f32.mrf.mxu0  ;;  %v379_v60 = vpop.f32.mrf.mxu1 }
  0xe3   : > { %v401_v59 = vmax.f32 %v334_v51, %v336_v52  ;;  %v409_v62 = vmax.f32 %v374_v55, %v376_v56  ;;  %v340_v8 = vadd.f32 %v339_v57, %v738_v21  ;;  %v380_v12 = vadd.f32 %v379_v60, %v738_v21 }
  0xe4   : > { %v341_v63 = vpop.f32.mrf.mxu0  ;;  %v381_v1 = vpop.f32.mrf.mxu1 }
  0xe5   : > { %v619_v0 = vpack.c.bf16 %v401_v59, %v400_v58  ;;  %v639_v2 = vpack.c.bf16 %v409_v62, %v408_v61  ;;  %v342_v4 = vadd.f32 %v341_v63, %v736_v19  ;;  %v382_v6 = vadd.f32 %v381_v1, %v736_v19 }
  0xe6   : > { %v343_v3 = vpop.f32.mrf.mxu0  ;;  %v383_v5 = vpop.f32.mrf.mxu1 }
  0xe7   : > { %651 = vst [vmem:[%s753_s25 + $0x8] sm:$0xff] %v619_v0   ;;  %655 = vst [vmem:[%s753_s25 + $0x28] sm:$0xff] %v639_v2   ;;  %v344_v9 = vadd.f32 %v343_v3, %v738_v21  ;;  %v384_v13 = vadd.f32 %v383_v5, %v738_v21  ;;  %v402_v16 = vmax.f32 %v340_v8, %v342_v4 }
  0xe8   : > { %v345_v7 = vpop.f32.mrf.mxu0  ;;  %v385_v11 = vpop.f32.mrf.mxu1  ;;  %v410_v20 = vmax.f32 %v380_v12, %v382_v6 }
  0xe9   : > { %v346_v10 = vadd.f32 %v345_v7, %v736_v19  ;;  %v386_v14 = vadd.f32 %v385_v11, %v736_v19 }
  0xea   : > { %v349_v15 = vpop.f32.mrf.mxu0  ;;  %v389_v18 = vpop.f32.mrf.mxu1 }
  0xeb   : > { %v403_v17 = vmax.f32 %v344_v9, %v346_v10  ;;  %v411_v22 = vmax.f32 %v384_v13, %v386_v14  ;;  %v350_v32 = vadd.f32 %v349_v15, %v738_v21  ;;  %v390_v36 = vadd.f32 %v389_v18, %v738_v21 }
  0xec   : > { %v351_v23 = vpop.f32.mrf.mxu0  ;;  %v391_v25 = vpop.f32.mrf.mxu1 }
  0xed   : > { %v624_v24 = vpack.c.bf16 %v403_v17, %v402_v16  ;;  %v644_v26 = vpack.c.bf16 %v411_v22, %v410_v20  ;;  %v352_v28 = vadd.f32 %v351_v23, %v736_v19  ;;  %v392_v30 = vadd.f32 %v391_v25, %v736_v19 }
  0xee   : > { %v353_v27 = vpop.f32.mrf.mxu0  ;;  %v393_v29 = vpop.f32.mrf.mxu1 }
  0xef   : > { %652 = vst [vmem:[%s753_s25 + $0x10] sm:$0xff] %v624_v24   ;;  %656 = vst [vmem:[%s753_s25 + $0x30] sm:$0xff] %v644_v26   ;;  %v354_v33 = vadd.f32 %v353_v27, %v738_v21  ;;  %v394_v37 = vadd.f32 %v393_v29, %v738_v21  ;;  %v404_v39 = vmax.f32 %v350_v32, %v352_v28 }
  0xf0   : > { %v355_v31 = vpop.f32.mrf.mxu0  ;;  %v395_v35 = vpop.f32.mrf.mxu1  ;;  %v412_v41 = vmax.f32 %v390_v36, %v392_v30 }
  0xf1   : > { %v356_v34 = vadd.f32 %v355_v31, %v736_v19  ;;  %v396_v38 = vadd.f32 %v395_v35, %v736_v19 }
  0xf3   : > { %v405_v40 = vmax.f32 %v354_v33, %v356_v34  ;;  %v413_v42 = vmax.f32 %v394_v37, %v396_v38 }
  0xf5   : > { %v629_v43 = vpack.c.bf16 %v405_v40, %v404_v39  ;;  %v649_v44 = vpack.c.bf16 %v413_v42, %v412_v41 }
  0xf7   : > { %653 = vst [vmem:[%s753_s25 + $0x18] sm:$0xff] %v629_v43   ;;  %657 = vst [vmem:[%s753_s25 + $0x38] sm:$0xff] %v649_v44  }
  0xf8 PF: > { %s13_s12 = sadd.s32 1, %s683_s12  }
  0xf9   : > { %p10_p4 = scmp.ge.s32.totalorder %s13_s12, 6  }
  0xfb   :  { %12 = sbr.rel (!%p10_p4) target bundleno = 1 (0x1), region = 62 }

// kernel: group_forward.3
= control target key start
LH: loop header
LB: loop body
LE: loop exit
PB: predicated region body
PF: predicated region fallthrough
CT: control target
= control target key end

     0   :  { %s600_s12 = smov 0   ;;  %s701_s0 = inlined_call_operand.vmem [shape: bf16[512,36], index: 0, kind: input, shape index: {}]   ;;  %s702_s1 = inlined_call_operand.vmem [shape: bf16[36,256], index: 1, kind: input, shape index: {}]   ;;  %s703_s2 = inlined_call_operand.vmem [shape: f32[1,256], index: 2, kind: input, shape index: {}]   ;;  %s704_s3 = inlined_call_operand.vmem [shape: f32[512,128], index: 3, kind: output, shape index: {}]  }
   0x1 LB: > { %s506_s13 = sadd.s32 4294967295, %s577_s12   ;;  %p510_p0 = scmp.ge.s32.totalorder %s577_s12, 1  ;;  %s577_s12 = sphi %s600_s12, %s13_s12  }
   0x2   : > { %p138_p1 = scmp.lt.s32.totalorder %s577_s12, 5 }
   0x4   : > { %p139_p2 = pnand %p510_p0, %p138_p1 }
   0x5   : > { %s511_s18 = sshll.u32 (!%p139_p2), %s506_s13, 4 }
   0x6   : > { %142 = sbr.rel (%p139_p2) target bundleno = 254 (0xfe), region = 32  ;;  %p163_p3 = scmp.lt.s32.totalorder (!%p139_p2), %s511_s18, 63 }
   0xb   : > { %v195_v0 = vld [vmem:[%s702_s1 + $0x20] sm:$0x33]  ;;  %vm298_vm0 = vcmask 1041408   ;;  %v557_v3 = vld [vmem:[%s702_s1 + $0x14] ss:$8 sps:$4 sm:$0xff]   ;;  %v579_v4 = vmov 0   ;;  %v198_v17 = vlaneseq }
   0xc   : > { %v528_v1 = vcombine.high %v195_v0, %v195_v0  ;;  %v527_v2 = vcombine.low %v195_v0, %v195_v0  ;;  %337 = vmatprep.mubr.bf16.mxu0 %v579_v4  ;;  %377 = vmatprep.mubr.bf16.mxu1 %v579_v4  ;;  %v559_v6 = vld [vmem:[%s702_s1 + $0x10] ss:$8 sps:$4 sm:$0xff]   ;;  %s706_s18 = smov (!%p163_p3, %s511_s18), 63  ;;  %v560_v7 = vld [vmem:[%s702_s1 + $0x4] ss:$8 sps:$4 sm:$0xff]   ;;  %vm273_vm1 = vcmask 293888  }
   0xd   : > { %s512_s23 = sshll.u32 %s706_s18, 2  ;;  %v562_v8 = vld [vmem:[%s702_s1] ss:$8 sps:$4 sm:$0xff]   ;;  %v199_v18 = vshrl.u32 %v198_v17, 7  ;;  %s514_s4 = sshll.u32 %s706_s18, 3 }
   0xe   : > { %529 = vmatprep.subr.msk.bf16.mxu0 %vm298_vm0, %v528_v1  ;;  %540 = vmatprep.subr.msk.bf16.mxu1 %vm298_vm0, %v528_v1  ;;  %v300_v5 = vsel %vm298_vm0, %v527_v2, 0  ;;  %s166_s26 = scalar_lea.vmem %s701_s0, %s512_s23  ;;  %v196_v21 = vld [vmem:[%s703_s2] sm:$0x3]  ;;  %s652_s7 = scalar_lea.vmem %s704_s3, %s514_s4 }
   0xf   : > { %316 = vmatpush1.bf16.msra.mxu0 %v300_v5  ;;  %543 = vmatpush1.bf16.msra.mxu1 %v300_v5  ;;  %v563_v9 = vld [vmem:[%s166_s26] sm:$0xff]   ;;  %v565_v11 = vld [vmem:[%s166_s26 + $0x8] sm:$0xff]   ;;  %v567_v13 = vld [vmem:[%s166_s26 + $0x10] sm:$0xff]   ;;  %v200_v19 = vsub.s32 0, %v199_v18  ;;  %v204_v20 = vsub.s32 1, %v199_v18 }
  0x10   : > { %317 = vmatprep.subr.bf16.mxu0 %v557_v3  ;;  %541 = vmatprep.subr.bf16.mxu1 %v557_v3  ;;  %v564_v10 = vld [vmem:[%s166_s26 + $0x20] sm:$0xff]   ;;  %v566_v12 = vld [vmem:[%s166_s26 + $0x28] sm:$0xff]   ;;  %v568_v14 = vld [vmem:[%s166_s26 + $0x30] sm:$0xff]  }
  0x11   : > { %v569_v15 = vld [vmem:[%s166_s26 + $0x18] sm:$0xff]   ;;  %v640_v22 = vrot.slane %v196_v21, %v200_v19  ;;  %v642_v23 = vrot.slane %v196_v21, %v204_v20 }
  0x12   : > { %v570_v16 = vld [vmem:[%s166_s26 + $0x38] sm:$0xff]  }
  0x13   : > { %318 = vmatpush1.bf16.msra.mxu0 %v559_v6  ;;  %544 = vmatpush1.bf16.msra.mxu1 %v559_v6 }
  0x14   : > { %319 = vmatprep.subr.bf16.mxu0 %v560_v7  ;;  %542 = vmatprep.subr.bf16.mxu1 %v560_v7 }
  0x17   : > { %320 = vmatpush1.bf16.msra.mxu0 %v562_v8  ;;  %545 = vmatpush1.bf16.msra.mxu1 %v562_v8 }
  0x1a   : > { %530 = vmatmul.mubr.msk.bf16.vlgmr.msra.gmra.mxu0 %vm273_vm1, %v563_v9  ;;  %534 = vmatmul.mubr.msk.bf16.vlgmr.msra.gmra.mxu1 %vm273_vm1, %v564_v10 }
  0x1b   : > { %347 = vmatprep.mubr.bf16.mxu0 %v579_v4  ;;  %387 = vmatprep.mubr.bf16.mxu1 %v579_v4 }
  0x22   : > { %531 = vmatmul.mubr.msk.bf16.gmra.mxu0 %vm273_vm1, %v565_v11  ;;  %535 = vmatmul.mubr.msk.bf16.gmra.mxu1 %vm273_vm1, %v566_v12 }
  0x23   : > { %357 = vmatprep.mubr.bf16.mxu0 %v579_v4  ;;  %397 = vmatprep.mubr.bf16.mxu1 %v579_v4 }
  0x2a   : > { %532 = vmatmul.mubr.msk.bf16.gmra.mxu0 %vm273_vm1, %v567_v13  ;;  %536 = vmatmul.mubr.msk.bf16.gmra.mxu1 %vm273_vm1, %v568_v14 }
  0x2b   : > { %367 = vmatprep.mubr.bf16.mxu0 %v579_v4  ;;  %407 = vmatprep.mubr.bf16.mxu1 %v579_v4 }
  0x32   : > { %533 = vmatmul.mubr.msk.bf16.gmra.mxu0 %vm273_vm1, %v569_v15  ;;  %537 = vmatmul.mubr.msk.bf16.gmra.mxu1 %vm273_vm1, %v570_v16 }
  0xda   : > { %v339_v24 = vpop.f32.mrf.mxu0  ;;  %v379_v25 = vpop.f32.mrf.mxu1 }
  0xdb   : > { %v340_v28 = vadd.f32 %v339_v24, %v640_v22  ;;  %v380_v29 = vadd.f32 %v379_v25, %v640_v22 }
  0xdc   : > { %v341_v26 = vpop.f32.mrf.mxu0  ;;  %v381_v27 = vpop.f32.mrf.mxu1 }
  0xdd   : > { %v342_v30 = vadd.f32 %v341_v26, %v642_v23  ;;  %v382_v31 = vadd.f32 %v381_v27, %v642_v23 }
  0xde   : > { %v343_v32 = vpop.f32.mrf.mxu0  ;;  %v383_v33 = vpop.f32.mrf.mxu1 }
  0xdf   : > { %v418_v34 = vmax.f32 %v340_v28, %v342_v30  ;;  %v426_v35 = vmax.f32 %v380_v29, %v382_v31  ;;  %v344_v38 = vadd.f32 %v343_v32, %v640_v22  ;;  %v384_v39 = vadd.f32 %v383_v33, %v640_v22 }
  0xe0   : > { %v345_v36 = vpop.f32.mrf.mxu0  ;;  %v385_v37 = vpop.f32.mrf.mxu1 }
  0xe1   : > { %434 = vst [vmem:[%s652_s7] sm:$0xff] %v418_v34  ;;  %442 = vst [vmem:[%s652_s7 + $0x40] sm:$0xff] %v426_v35  ;;  %v346_v40 = vadd.f32 %v345_v36, %v642_v23  ;;  %v386_v41 = vadd.f32 %v385_v37, %v642_v23 }
  0xe2   : > { %v349_v42 = vpop.f32.mrf.mxu0  ;;  %v389_v43 = vpop.f32.mrf.mxu1 }
  0xe3   : > { %v419_v44 = vmax.f32 %v344_v38, %v346_v40  ;;  %v427_v45 = vmax.f32 %v384_v39, %v386_v41  ;;  %v350_v48 = vadd.f32 %v349_v42, %v640_v22  ;;  %v390_v49 = vadd.f32 %v389_v43, %v640_v22 }
  0xe4   : > { %v351_v46 = vpop.f32.mrf.mxu0  ;;  %v391_v47 = vpop.f32.mrf.mxu1 }
  0xe5   : > { %435 = vst [vmem:[%s652_s7 + $0x8] sm:$0xff] %v419_v44  ;;  %443 = vst [vmem:[%s652_s7 + $0x48] sm:$0xff] %v427_v45  ;;  %v352_v50 = vadd.f32 %v351_v46, %v642_v23  ;;  %v392_v51 = vadd.f32 %v391_v47, %v642_v23 }
  0xe6   : > { %v353_v52 = vpop.f32.mrf.mxu0  ;;  %v393_v53 = vpop.f32.mrf.mxu1 }
  0xe7   : > { %v420_v54 = vmax.f32 %v350_v48, %v352_v50  ;;  %v428_v55 = vmax.f32 %v390_v49, %v392_v51  ;;  %v354_v58 = vadd.f32 %v353_v52, %v640_v22  ;;  %v394_v59 = vadd.f32 %v393_v53, %v640_v22 }
  0xe8   : > { %v355_v56 = vpop.f32.mrf.mxu0  ;;  %v395_v57 = vpop.f32.mrf.mxu1 }
  0xe9   : > { %436 = vst [vmem:[%s652_s7 + $0x10] sm:$0xff] %v420_v54  ;;  %444 = vst [vmem:[%s652_s7 + $0x50] sm:$0xff] %v428_v55  ;;  %v356_v60 = vadd.f32 %v355_v56, %v642_v23  ;;  %v396_v61 = vadd.f32 %v395_v57, %v642_v23 }
  0xea   : > { %v359_v62 = vpop.f32.mrf.mxu0  ;;  %v399_v63 = vpop.f32.mrf.mxu1 }
  0xeb   : > { %v421_v0 = vmax.f32 %v354_v58, %v356_v60  ;;  %v429_v1 = vmax.f32 %v394_v59, %v396_v61  ;;  %v360_v4 = vadd.f32 %v359_v62, %v640_v22  ;;  %v400_v5 = vadd.f32 %v399_v63, %v640_v22 }
  0xec   : > { %v361_v2 = vpop.f32.mrf.mxu0  ;;  %v401_v3 = vpop.f32.mrf.mxu1 }
  0xed   : > { %437 = vst [vmem:[%s652_s7 + $0x18] sm:$0xff] %v421_v0  ;;  %445 = vst [vmem:[%s652_s7 + $0x58] sm:$0xff] %v429_v1  ;;  %v362_v6 = vadd.f32 %v361_v2, %v642_v23  ;;  %v402_v7 = vadd.f32 %v401_v3, %v642_v23 }
  0xee   : > { %v363_v8 = vpop.f32.mrf.mxu0  ;;  %v403_v9 = vpop.f32.mrf.mxu1 }
  0xef   : > { %v422_v10 = vmax.f32 %v360_v4, %v362_v6  ;;  %v430_v11 = vmax.f32 %v400_v5, %v402_v7  ;;  %v364_v14 = vadd.f32 %v363_v8, %v640_v22  ;;  %v404_v15 = vadd.f32 %v403_v9, %v640_v22 }
  0xf0   : > { %v365_v12 = vpop.f32.mrf.mxu0  ;;  %v405_v13 = vpop.f32.mrf.mxu1 }
  0xf1   : > { %438 = vst [vmem:[%s652_s7 + $0x20] sm:$0xff] %v422_v10  ;;  %446 = vst [vmem:[%s652_s7 + $0x60] sm:$0xff] %v430_v11  ;;  %v366_v16 = vadd.f32 %v365_v12, %v642_v23  ;;  %v406_v17 = vadd.f32 %v405_v13, %v642_v23 }
  0xf2   : > { %v369_v18 = vpop.f32.mrf.mxu0  ;;  %v409_v19 = vpop.f32.mrf.mxu1 }
  0xf3   : > { %v423_v20 = vmax.f32 %v364_v14, %v366_v16  ;;  %v431_v21 = vmax.f32 %v404_v15, %v406_v17  ;;  %v370_v26 = vadd.f32 %v369_v18, %v640_v22  ;;  %v410_v27 = vadd.f32 %v409_v19, %v640_v22 }
  0xf4   : > { %v371_v24 = vpop.f32.mrf.mxu0  ;;  %v411_v25 = vpop.f32.mrf.mxu1 }
  0xf5   : > { %439 = vst [vmem:[%s652_s7 + $0x28] sm:$0xff] %v423_v20  ;;  %447 = vst [vmem:[%s652_s7 + $0x68] sm:$0xff] %v431_v21  ;;  %v372_v28 = vadd.f32 %v371_v24, %v642_v23  ;;  %v412_v29 = vadd.f32 %v411_v25, %v642_v23 }
  0xf6   : > { %v373_v30 = vpop.f32.mrf.mxu0  ;;  %v413_v31 = vpop.f32.mrf.mxu1 }
  0xf7   : > { %v424_v32 = vmax.f32 %v370_v26, %v372_v28  ;;  %v432_v33 = vmax.f32 %v410_v27, %v412_v29  ;;  %v374_v36 = vadd.f32 %v373_v30, %v640_v22  ;;  %v414_v37 = vadd.f32 %v413_v31, %v640_v22 }
  0xf8   : > { %v375_v34 = vpop.f32.mrf.mxu0  ;;  %v415_v35 = vpop.f32.mrf.mxu1 }
  0xf9   : > { %440 = vst [vmem:[%s652_s7 + $0x30] sm:$0xff] %v424_v32  ;;  %448 = vst [vmem:[%s652_s7 + $0x70] sm:$0xff] %v432_v33  ;;  %v376_v38 = vadd.f32 %v375_v34, %v642_v23  ;;  %v416_v39 = vadd.f32 %v415_v35, %v642_v23 }
  0xfb   : > { %v425_v40 = vmax.f32 %v374_v36, %v376_v38  ;;  %v433_v41 = vmax.f32 %v414_v37, %v416_v39 }
  0xfd   : > { %441 = vst [vmem:[%s652_s7 + $0x38] sm:$0xff] %v425_v40  ;;  %449 = vst [vmem:[%s652_s7 + $0x78] sm:$0xff] %v433_v41 }
  0xfe PF: > { %s13_s12 = sadd.s32 1, %s577_s12  }
  0xff   : > { %p10_p4 = scmp.ge.s32.totalorder %s13_s12, 6  }
 0x101   :  { %12 = sbr.rel (!%p10_p4) target bundleno = 1 (0x1), region = 62 }

</bundles_post_ra>
